<compile_context>
chip_gen: v5e
topology: v5e:2x2
jax: 0.10.0
libtpu: 0.0.40
codegen_flags: <defaults>
</compile_context>

<pallas_src>
import functools

import jax
import jax.numpy as jnp
from jax.experimental import pallas as pl
from jax.experimental.pallas import tpu as pltpu


def _act_fn(name):
    if name is None:
        return lambda v: v
    if name in ("silu", "swish"):
        return lambda v: v * jax.nn.sigmoid(v)
    if name == "relu":
        return lambda v: jnp.maximum(v, 0.0)
    if name == "lrelu":
        # nn.LeakyReLU(0.1) per the source module
        return lambda v: jnp.where(v >= 0.0, v, 0.1 * v)
    if name == "hardsigmoid":
        return lambda v: jnp.clip(v * (1.0 / 6.0) + 0.5, 0.0, 1.0)
    raise ValueError(f"Unsupported act type: {name}")


def _round_up(a, b):
    return (a + b - 1) // b * b


def _conv_bn_kernel(w_ref, b_ref, p_ref, o_ref, acc_ref, *, act):
    # w_ref: (TCo, TK) bf16   b_ref: (TCo, 1) f32
    # p_ref: (TK, THW) bf16   o_ref: (TCo, THW)   acc_ref: (TCo, THW) f32
    k = pl.program_id(2)

    @pl.when(k == 0)
    def _():
        acc_ref[...] = jnp.zeros_like(acc_ref)

    acc_ref[...] += jnp.dot(w_ref[...], p_ref[...],
                            preferred_element_type=jnp.float32)   # bf16 MXU, f32 acc

    @pl.when(k == pl.num_programs(2) - 1)
    def _():
        y = acc_ref[...] + b_ref[...]        # folded BN shift
        y = _act_fn(act)(y)                  # fused epilogue
        o_ref[...] = y.astype(o_ref.dtype)


def conv_bn_layer(x, weight, gamma, beta, running_mean, running_var,
                  *, stride=1, padding=0, eps=1e-5, act=None):
    """Fused Conv2d(bias=False) + BatchNorm2d(eval) + activation.

    x: (N, C_in, H, W); weight: (C_out, C_in, K, K); BN params: (C_out,).
    Returns (N, C_out, H_out, W_out).
    """
    N, C_in, H, W = x.shape
    C_out, _, K, _ = weight.shape

    # ---- fold BN into the conv weight and a per-channel bias (host side) ----
    scale = gamma / jnp.sqrt(running_var + eps)                # (C_out,)
    w_folded = weight * scale[:, None, None, None]             # (C_out, C_in, K, K)
    bias = beta - running_mean * scale                         # (C_out,)

    # ---- conv -> GEMM operand (layout plumbing only) ----
    if padding > 0:
        x_p = jnp.pad(x, ((0, 0), (0, 0), (padding, padding), (padding, padding)))
    else:
        x_p = x
    Hp_in, Wp_in = x_p.shape[2], x_p.shape[3]
    H_out = (Hp_in - K) // stride + 1
    W_out = (Wp_in - K) // stride + 1
    HWo = H_out * W_out
    CKK = C_in * K * K

    if K == 1 and stride == 1:
        # 1x1 conv fast path: no im2col materialization at all.
        patches = x_p.reshape(N, C_in, HWo)
    else:
        cols = []
        for kh in range(K):
            for kw in range(K):
                sl = x_p[:, :, kh:kh + stride * H_out:stride,
                               kw:kw + stride * W_out:stride]   # (N, C_in, H_out, W_out)
                cols.append(sl.reshape(N, C_in, HWo))
        # ordering matches weight.reshape(C_out, C_in*K*K): index = c*K*K + kh*K + kw
        patches = jnp.stack(cols, axis=2).reshape(N, CKK, HWo)

    w_mat = w_folded.reshape(C_out, CKK)
    b_col = bias.reshape(C_out, 1)

    # ---- tile selection (lane-dense, VMEM-bounded on all generations) ----
    # Spatial: pad each image to a multiple of 128 only, then collapse batch
    # into the lane axis.
    HWp = _round_up(HWo, 128)
    NHW = N * HWp
    THW = 128
    for cand in (2048, 1024, 512, 256):
        if NHW % cand == 0:
            THW = cand
            break

    # Output channels: up to 256 rows per MXU pass (full 256-wide MXU on v6e/v7x).
    if C_out <= 256:
        Cp = _round_up(C_out, 8)
        TCo = Cp
    else:
        TCo = 256
        Cp = _round_up(C_out, TCo)

    # Contraction: grid-tiled so per-step VMEM never scales with C_in*K*K.
    CKKp = _round_up(CKK, 128)
    if CKKp <= 1024:
        TK = CKKp
    else:
        TK = 512
        CKKp = _round_up(CKK, TK)

    # ---- pad + cast operands (bf16 GEMM inputs, f32 bias) ----
    patches = jnp.pad(patches, ((0, 0), (0, CKKp - CKK), (0, HWp - HWo)))
    patches = jnp.transpose(patches, (1, 0, 2)).reshape(CKKp, NHW)
    patches = patches.astype(jnp.bfloat16)

    w_mat = jnp.pad(w_mat, ((0, Cp - C_out), (0, CKKp - CKK))).astype(jnp.bfloat16)
    b_col = jnp.pad(b_col, ((0, Cp - C_out), (0, 0))).astype(jnp.float32)

    grid = (Cp // TCo, NHW // THW, CKKp // TK)
    n_co, n_hw, _ = grid
    out_bytes = jnp.dtype(x.dtype).itemsize

    cost = pl.CostEstimate(
        flops=2 * Cp * NHW * CKKp,
        transcendentals=(Cp * NHW if act in ("silu", "swish") else 0),
        bytes_accessed=(2 * Cp * CKKp * n_hw      # bf16 weights, re-read per hw tile
                        + 2 * CKKp * NHW * n_co   # bf16 patches, re-read per co tile
                        + Cp * NHW * out_bytes    # output, written once
                        + 4 * Cp),                # bias
    )

    out = pl.pallas_call(
        functools.partial(_conv_bn_kernel, act=act),
        out_shape=jax.ShapeDtypeStruct((Cp, NHW), x.dtype),
        grid_spec=pltpu.PrefetchScalarGridSpec(
            num_scalar_prefetch=0,
            grid=grid,
            in_specs=[
                pl.BlockSpec((TCo, TK), lambda co, hw, k: (co, k)),
                pl.BlockSpec((TCo, 1), lambda co, hw, k: (co, 0)),
                pl.BlockSpec((TK, THW), lambda co, hw, k: (k, hw)),
            ],
            out_specs=pl.BlockSpec((TCo, THW), lambda co, hw, k: (co, hw)),
            scratch_shapes=[pltpu.VMEM((TCo, THW), jnp.float32)],
        ),
        compiler_params=pltpu.CompilerParams(
            dimension_semantics=("parallel", "parallel", "arbitrary"),
            vmem_limit_bytes=32 * 1024 * 1024,   # safe headroom on v7x's 64 MiB VMEM
        ),
        cost_estimate=cost,
    )(w_mat, b_col, patches)

    # strip padding, back to NCHW
    out = out.reshape(Cp, N, HWp)[:C_out, :, :HWo]
    return jnp.transpose(out, (1, 0, 2)).reshape(N, C_out, H_out, W_out)


def _reference(x, weight, gamma, beta, mean, var, *, stride, padding, eps, act):
    y = jax.lax.conv_general_dilated(
        x, weight, window_strides=(stride, stride),
        padding=[(padding, padding), (padding, padding)],
        dimension_numbers=("NCHW", "OIHW", "NCHW"))
    scale = gamma / jnp.sqrt(var + eps)
    y = y * scale[None, :, None, None] + (beta - mean * scale)[None, :, None, None]
    return _act_fn(act)(y)


if __name__ == "__main__":
    key = jax.random.PRNGKey(0)
    k_x, k_w, k_g, k_b, k_m, k_v = jax.random.split(key, 6)

    N, C_in, C_out, H, W, K = 2, 4, 8, 16, 16, 3
    stride, padding = 1, 0          # module defaults (filter_size=3, padding=0)

    x = jax.random.normal(k_x, (N, C_in, H, W), dtype=jnp.float32)
    weight = jax.random.normal(k_w, (C_out, C_in, K, K), dtype=jnp.float32) * 0.1
    gamma = 1.0 + 0.1 * jax.random.normal(k_g, (C_out,), dtype=jnp.float32)
    beta = 0.1 * jax.random.normal(k_b, (C_out,), dtype=jnp.float32)
    running_mean = 0.1 * jax.random.normal(k_m, (C_out,), dtype=jnp.float32)
    running_var = jax.random.uniform(k_v, (C_out,), dtype=jnp.float32,
                                     minval=0.5, maxval=1.5)

    # act=None is the module default; also exercise the SiLU epilogue path.
    for act in (None, "silu"):
        out = conv_bn_layer(x, weight, gamma, beta, running_mean, running_var,
                            stride=stride, padding=padding, act=act)
        out = jax.block_until_ready(out)
        ref = _reference(x, weight, gamma, beta, running_mean, running_var,
                         stride=stride, padding=padding, eps=1e-5, act=act)
        assert out.shape == ref.shape == (N, C_out, H - K + 1, W - K + 1)
        # bf16 GEMM inputs, f32 accumulation -> slightly looser tolerance.
        assert jnp.allclose(out, ref, atol=3e-2, rtol=3e-2), f"mismatch (act={act})"

    print("KERNEL_OK")
</pallas_src>

<mosaic_0001>
module attributes {stable_mosaic.version = 11 : i64} {
  func.func @_conv_bn_kernel(%arg0: i32, %arg1: i32, %arg2: i32, %arg3: memref<8x128xbf16, #tpu.memory_space<vmem>>, %arg4: memref<8x1xf32, #tpu.memory_space<vmem>>, %arg5: memref<128x512xbf16, #tpu.memory_space<vmem>>, %arg6: memref<8x512xf32, #tpu.memory_space<vmem>>, %arg7: memref<8x512xf32, #tpu.memory_space<vmem>>) attributes {dimension_semantics = [#tpu.dimension_semantics<parallel>, #tpu.dimension_semantics<parallel>, #tpu.dimension_semantics<arbitrary>], iteration_bounds = array<i64: 1, 1, 1>, scalar_prefetch = 0 : i64, scratch_operands = 1 : i64, tpu.core_type = #tpu.core_type<tc>, window_params = [{transform_indices = @transform_0, window_bounds = array<i64: 8, 128>}, {transform_indices = @transform_1, window_bounds = array<i64: 8, 1>}, {transform_indices = @transform_2, window_bounds = array<i64: 128, 512>}, {transform_indices = @transform_3, window_bounds = array<i64: 8, 512>}]} {
    %c0_i32 = arith.constant 0 : i32
    %0 = arith.cmpi eq, %arg2, %c0_i32 : i32
    %1 = arith.extui %0 : i1 to i32
    %c0_i32_0 = arith.constant 0 : i32
    %2 = arith.cmpi ne, %1, %c0_i32_0 : i32
    scf.if %2 {
      %cst_10 = arith.constant 0.000000e+00 : f32
      %12 = vector.broadcast %cst_10 : f32 to vector<8x512xf32>
      %c0_11 = arith.constant 0 : index
      %c0_12 = arith.constant 0 : index
      %13 = vector.load %arg7[%c0_11, %c0_12] : memref<8x512xf32, #tpu.memory_space<vmem>>, vector<8x512xf32>
      tpu.vector_store %arg7[%c0_11, %c0_12], %12 {strides = array<i32>} : memref<8x512xf32, #tpu.memory_space<vmem>>, vector<8x512xf32>,
    } else {
    }
    %c0 = arith.constant 0 : index
    %c0_1 = arith.constant 0 : index
    %3 = vector.load %arg7[%c0, %c0_1] : memref<8x512xf32, #tpu.memory_space<vmem>>, vector<8x512xf32>
    %c0_2 = arith.constant 0 : index
    %c0_3 = arith.constant 0 : index
    %4 = vector.load %arg3[%c0_2, %c0_3] : memref<8x128xbf16, #tpu.memory_space<vmem>>, vector<8x128xbf16>
    %c0_4 = arith.constant 0 : index
    %c0_5 = arith.constant 0 : index
    %5 = vector.load %arg5[%c0_4, %c0_5] : memref<128x512xbf16, #tpu.memory_space<vmem>>, vector<128x512xbf16>
    %cst = arith.constant dense<0.000000e+00> : vector<8x512xf32>
    %6 = tpu.matmul %4, %5, %cst {dimension_numbers = #tpu.dot_dimension_numbers<[1], [0], [0], [1], [0, 0, 1, 1], [], []>} : vector<8x128xbf16>, vector<128x512xbf16>, vector<8x512xf32> -> vector<8x512xf32>
    %7 = arith.addf %3, %6 : vector<8x512xf32>
    %c0_6 = arith.constant 0 : index
    %c0_7 = arith.constant 0 : index
    %8 = vector.load %arg7[%c0_6, %c0_7] : memref<8x512xf32, #tpu.memory_space<vmem>>, vector<8x512xf32>
    tpu.vector_store %arg7[%c0_6, %c0_7], %7 {strides = array<i32>} : memref<8x512xf32, #tpu.memory_space<vmem>>, vector<8x512xf32>,
    %c0_i32_8 = arith.constant 0 : i32
    %9 = arith.cmpi eq, %arg2, %c0_i32_8 : i32
    %10 = arith.extui %9 : i1 to i32
    %c0_i32_9 = arith.constant 0 : i32
    %11 = arith.cmpi ne, %10, %c0_i32_9 : i32
    scf.if %11 {
      %c0_10 = arith.constant 0 : index
      %c0_11 = arith.constant 0 : index
      %12 = vector.load %arg7[%c0_10, %c0_11] : memref<8x512xf32, #tpu.memory_space<vmem>>, vector<8x512xf32>
      %c0_12 = arith.constant 0 : index
      %c0_13 = arith.constant 0 : index
      %13 = vector.load %arg4[%c0_12, %c0_13] : memref<8x1xf32, #tpu.memory_space<vmem>>, vector<8x1xf32>
      %14 = vector.broadcast %13 : vector<8x1xf32> to vector<8x512xf32>
      %15 = arith.addf %12, %14 : vector<8x512xf32>
      %c0_14 = arith.constant 0 : index
      %c0_15 = arith.constant 0 : index
      %16 = vector.load %arg6[%c0_14, %c0_15] : memref<8x512xf32, #tpu.memory_space<vmem>>, vector<8x512xf32>
      tpu.vector_store %arg6[%c0_14, %c0_15], %15 {strides = array<i32>} : memref<8x512xf32, #tpu.memory_space<vmem>>, vector<8x512xf32>,
    } else {
    }
    return
  }
  func.func @transform_0(%arg0: i32, %arg1: i32, %arg2: i32) -> (i32, i32) {
    %c0_i32 = arith.constant 0 : i32
    return %arg0, %arg2 : i32, i32
  }
  func.func @transform_1(%arg0: i32, %arg1: i32, %arg2: i32) -> (i32, i32) {
    %c0_i32 = arith.constant 0 : i32
    %c0_i32_0 = arith.constant 0 : i32
    return %arg0, %c0_i32 : i32, i32
  }
  func.func @transform_2(%arg0: i32, %arg1: i32, %arg2: i32) -> (i32, i32) {
    %c0_i32 = arith.constant 0 : i32
    return %arg2, %arg1 : i32, i32
  }
  func.func @transform_3(%arg0: i32, %arg1: i32, %arg2: i32) -> (i32, i32) {
    %c0_i32 = arith.constant 0 : i32
    return %arg0, %arg1 : i32, i32
  }
}

</mosaic_0001>

<bundles_post_ra>
// kernel: tpu_custom_call.1
= control target key start
LH: loop header
LB: loop body
LE: loop exit
PB: predicated region body
PF: predicated region fallthrough
CT: control target
= control target key end

     0   :  { %8 = vsyncpa [#allocation4], 0  ;;  %s589_s0 = inlined_call_operand.vmem [shape: bf16[8,128], index: 0, kind: input, shape index: {}]   ;;  %s590_s1 = inlined_call_operand.vmem [shape: f32[8,1], index: 1, kind: input, shape index: {}]   ;;  %s591_s2 = inlined_call_operand.hbm [shape: bf16[128,512], index: 2, kind: input, shape index: {}]   ;;  %s592_s3 = inlined_call_operand.hbm [shape: f32[8,512], index: 3, kind: output, shape index: {}]  }
   0x1   :  { %9 = vsyncpa [#allocation5], 0  ;;  %s18_s14 = sshll.u32 %s591_s2, 4  ;;  %s552_s15 = smov [#allocation3]   ;;  %s19_s14 = int_to_ptr.hbm [resolvable:$true] %s18_s14 }
   0x2   :  { %s20_s16 = sshll.u32 %s552_s15, 4  ;;  %s553_s17 = smov 256   ;;  %s21_s16 = int_to_ptr.vmem [resolvable:$true] %s20_s16 }
   0x3   :  { %s554_s18 = smov 16  }
   0x4   :  { %26 = dma.hbm_to_vmem [thread:$0]  %s19_s14, 4096, %s21_s16, [#allocation4], %s553_s17, %s553_s17, %s554_s18  }
   0x5   :  { %548 = dma.done.wait [#allocation4], 4096  }
   0x6   :  { %549 = vsyncadd [#allocation4], 4294963200  ;;  %v448_v0 = vld [vmem:[#allocation3 + $0xe0] sm:$0xf]  ;;  %v492_v1 = vld [vmem:[#allocation3 + $0xec] sm:$0xf0] }
   0x7   :  { %v490_v2 = vld [vmem:[#allocation3 + $0xe4] sm:$0xf]  ;;  %v449_v3 = vor.u32 %v492_v1, %v448_v0  ;;  %v450_v4 = vld [vmem:[#allocation3 + $0xf0] sm:$0xf0]  ;;  %v456_v5 = vld [vmem:[#allocation3 + $0xe8] sm:$0xf] }
   0x8   :  { %v493_v6 = vld [vmem:[#allocation3 + $0xf4] sm:$0xf0]  ;;  %v453_v7 = vor.u32 %v490_v2, %v450_v4  ;;  %v491_v9 = vld [vmem:[#allocation3 + $0xec] sm:$0xf]  ;;  %v458_v10 = vld [vmem:[#allocation3 + $0xf8] sm:$0xf0] }
   0x9   :  { %v457_v8 = vor.u32 %v493_v6, %v456_v5  ;;  %v432_v11 = vld [vmem:[#allocation3 + $0xc0] sm:$0xf]  ;;  %236 = vmatpush.bf16.msra.mxu0 %v449_v3  ;;  %v461_v12 = vor.u32 %v491_v9, %v458_v10  ;;  %v488_v13 = vld [vmem:[#allocation3 + $0xcc] sm:$0xf0]  ;;  %v486_v14 = vld [vmem:[#allocation3 + $0xc4] sm:$0xf] }
   0xa   :  { %v434_v15 = vld [vmem:[#allocation3 + $0xd0] sm:$0xf0]  ;;  %249 = vmatpush.bf16.msra.mxu1 %v453_v7  ;;  %v433_v16 = vor.u32 %v488_v13, %v432_v11  ;;  %v440_v18 = vld [vmem:[#allocation3 + $0xc8] sm:$0xf]  ;;  %v489_v19 = vld [vmem:[#allocation3 + $0xd4] sm:$0xf0] }
   0xb   :  { %262 = vmatpush.bf16.msra.mxu2 %v457_v8  ;;  %v437_v17 = vor.u32 %v486_v14, %v434_v15  ;;  %v487_v20 = vld [vmem:[#allocation3 + $0xcc] sm:$0xf]  ;;  %275 = vmatpush.bf16.msra.mxu3 %v461_v12  ;;  %v441_v21 = vor.u32 %v489_v19, %v440_v18  ;;  %v442_v22 = vld [vmem:[#allocation3 + $0xd8] sm:$0xf0]  ;;  %v416_v23 = vld [vmem:[#allocation3 + $0xa0] sm:$0xf] }
   0xc   :  { %v484_v24 = vld [vmem:[#allocation3 + $0xac] sm:$0xf0]  ;;  %v445_v25 = vor.u32 %v487_v20, %v442_v22  ;;  %v482_v26 = vld [vmem:[#allocation3 + $0xa4] sm:$0xf]  ;;  %v418_v27 = vld [vmem:[#allocation3 + $0xb0] sm:$0xf0] }
   0xd   :  { %v424_v28 = vld [vmem:[#allocation3 + $0xa8] sm:$0xf]  ;;  %237 = vmatpush.bf16.msra.mxu0 %v433_v16  ;;  %v417_v29 = vor.u32 %v484_v24, %v416_v23  ;;  %v485_v30 = vld [vmem:[#allocation3 + $0xb4] sm:$0xf0]  ;;  %v483_v31 = vld [vmem:[#allocation3 + $0xac] sm:$0xf]  ;;  %v421_v33 = vor.u32 %v482_v26, %v418_v27 }
   0xe   :  { %v426_v32 = vld [vmem:[#allocation3 + $0xb8] sm:$0xf0]  ;;  %250 = vmatpush.bf16.msra.mxu1 %v437_v17  ;;  %v425_v34 = vor.u32 %v485_v30, %v424_v28  ;;  %v400_v35 = vld [vmem:[#allocation3 + $0x80] sm:$0xf]  ;;  %v480_v36 = vld [vmem:[#allocation3 + $0x8c] sm:$0xf0] }
   0xf   :  { %263 = vmatpush.bf16.msra.mxu2 %v441_v21  ;;  %v478_v37 = vld [vmem:[#allocation3 + $0x84] sm:$0xf]  ;;  %276 = vmatpush.bf16.msra.mxu3 %v445_v25  ;;  %v429_v38 = vor.u32 %v483_v31, %v426_v32  ;;  %v402_v39 = vld [vmem:[#allocation3 + $0x90] sm:$0xf0]  ;;  %v408_v40 = vld [vmem:[#allocation3 + $0x88] sm:$0xf]  ;;  %v401_v44 = vor.u32 %v480_v36, %v400_v35 }
  0x10   :  { %v481_v41 = vld [vmem:[#allocation3 + $0x94] sm:$0xf0]  ;;  %v479_v42 = vld [vmem:[#allocation3 + $0x8c] sm:$0xf]  ;;  %v410_v43 = vld [vmem:[#allocation3 + $0x98] sm:$0xf0]  ;;  %v405_v45 = vor.u32 %v478_v37, %v402_v39 }
  0x11   :  { %238 = vmatpush.bf16.msra.mxu0 %v417_v29  ;;  %v409_v46 = vor.u32 %v481_v41, %v408_v40  ;;  %v384_v47 = vld [vmem:[#allocation3 + $0x60] sm:$0xf]  ;;  %v476_v48 = vld [vmem:[#allocation3 + $0x6c] sm:$0xf0]  ;;  %v474_v49 = vld [vmem:[#allocation3 + $0x64] sm:$0xf]  ;;  %v413_v50 = vor.u32 %v479_v42, %v410_v43 }
  0x12   :  { %251 = vmatpush.bf16.msra.mxu1 %v421_v33  ;;  %v386_v51 = vld [vmem:[#allocation3 + $0x70] sm:$0xf0]  ;;  %v392_v52 = vld [vmem:[#allocation3 + $0x68] sm:$0xf]  ;;  %v477_v53 = vld [vmem:[#allocation3 + $0x74] sm:$0xf0]  ;;  %v385_v56 = vor.u32 %v476_v48, %v384_v47 }
  0x13   :  { %264 = vmatpush.bf16.msra.mxu2 %v425_v34  ;;  %277 = vmatpush.bf16.msra.mxu3 %v429_v38  ;;  %v475_v54 = vld [vmem:[#allocation3 + $0x6c] sm:$0xf]  ;;  %v394_v55 = vld [vmem:[#allocation3 + $0x78] sm:$0xf0]  ;;  %v389_v57 = vor.u32 %v474_v49, %v386_v51  ;;  %v393_v58 = vor.u32 %v477_v53, %v392_v52  ;;  %v368_v59 = vld [vmem:[#allocation3 + $0x40] sm:$0xf] }
  0x14   :  { %v472_v60 = vld [vmem:[#allocation3 + $0x4c] sm:$0xf0]  ;;  %v470_v61 = vld [vmem:[#allocation3 + $0x44] sm:$0xf]  ;;  %v397_v62 = vor.u32 %v475_v54, %v394_v55  ;;  %v370_v63 = vld [vmem:[#allocation3 + $0x50] sm:$0xf0] }
  0x15   :  { %239 = vmatpush.bf16.msra.mxu0 %v401_v44  ;;  %v376_v0 = vld [vmem:[#allocation3 + $0x48] sm:$0xf]  ;;  %v473_v1 = vld [vmem:[#allocation3 + $0x54] sm:$0xf0]  ;;  %v471_v2 = vld [vmem:[#allocation3 + $0x4c] sm:$0xf]  ;;  %v369_v4 = vor.u32 %v472_v60, %v368_v59  ;;  %v373_v6 = vor.u32 %v470_v61, %v370_v63 }
  0x16   :  { %252 = vmatpush.bf16.msra.mxu1 %v405_v45  ;;  %v378_v3 = vld [vmem:[#allocation3 + $0x58] sm:$0xf0]  ;;  %v352_v5 = vld [vmem:[#allocation3 + $0x20] sm:$0xf]  ;;  %v377_v7 = vor.u32 %v473_v1, %v376_v0  ;;  %v468_v8 = vld [vmem:[#allocation3 + $0x2c] sm:$0xf0] }
  0x17   :  { %265 = vmatpush.bf16.msra.mxu2 %v409_v46  ;;  %278 = vmatpush.bf16.msra.mxu3 %v413_v50  ;;  %v466_v9 = vld [vmem:[#allocation3 + $0x24] sm:$0xf]  ;;  %v354_v10 = vld [vmem:[#allocation3 + $0x30] sm:$0xf0]  ;;  %v381_v11 = vor.u32 %v471_v2, %v378_v3  ;;  %v360_v12 = vld [vmem:[#allocation3 + $0x28] sm:$0xf]  ;;  %v353_v18 = vor.u32 %v468_v8, %v352_v5 }
  0x18   :  { %v469_v13 = vld [vmem:[#allocation3 + $0x34] sm:$0xf0]  ;;  %v303_v14 = vld [vmem:[%s590_s1] sm:$0xff]  ;;  %v467_v15 = vld [vmem:[#allocation3 + $0x2c] sm:$0xf]  ;;  %v555_v17 = vmov 0   ;;  %v357_v19 = vor.u32 %v466_v9, %v354_v10 }
  0x19   :  { %240 = vmatpush.bf16.msra.mxu0 %v385_v56  ;;  %v362_v16 = vld [vmem:[#allocation3 + $0x38] sm:$0xf0]  ;;  %499 = vset.pattern.permute.xlu0 %v555_v17  ;;  %v361_v20 = vor.u32 %v469_v13, %v360_v12  ;;  %v336_v21 = vld [vmem:[#allocation3] sm:$0xf]  ;;  %v464_v22 = vld [vmem:[#allocation3 + $0xc] sm:$0xf0] }
  0x1a   :  { %253 = vmatpush.bf16.msra.mxu1 %v389_v57  ;;  %306 = vperm.xlu0 %499, %v303_v14   ;;  %v462_v23 = vld [vmem:[#allocation3 + $0x4] sm:$0xf]  ;;  %v365_v24 = vor.u32 %v467_v15, %v362_v16  ;;  %v338_v25 = vld [vmem:[#allocation3 + $0x10] sm:$0xf0]  ;;  %v344_v26 = vld [vmem:[#allocation3 + $0x8] sm:$0xf]  ;;  %v337_v30 = vor.u32 %v464_v22, %v336_v21 }
  0x1b   :  { %266 = vmatpush.bf16.msra.mxu2 %v393_v58  ;;  %279 = vmatpush.bf16.msra.mxu3 %v397_v62  ;;  %v465_v27 = vld [vmem:[#allocation3 + $0x14] sm:$0xf0]  ;;  %v463_v28 = vld [vmem:[#allocation3 + $0xc] sm:$0xf]  ;;  %v346_v29 = vld [vmem:[#allocation3 + $0x18] sm:$0xf0]  ;;  %v341_v31 = vor.u32 %v462_v23, %v338_v25 }
  0x1c   :  { %v345_v32 = vor.u32 %v465_v27, %v344_v26  ;;  %v349_v33 = vor.u32 %v463_v28, %v346_v29  ;;  %v43_v34 = vld [vmem:[%s589_s0] sm:$0xf]  ;;  %s556_s21 = smov [#allocation6]   ;;  %s324_s0 = sshll.u32 %s592_s3, 4  ;;  %s325_s0 = int_to_ptr.hbm [resolvable:$true] %s324_s0 }
  0x1d   :  { %241 = vmatpush.bf16.msra.mxu0 %v369_v4  ;;  %s322_s22 = sshll.u32 %s556_s21, 4  ;;  %s323_s22 = int_to_ptr.vmem [resolvable:$true] %s322_s22 }
  0x1e   :  { %254 = vmatpush.bf16.msra.mxu1 %v373_v6 }
  0x1f   :  { %267 = vmatpush.bf16.msra.mxu2 %v377_v7  ;;  %280 = vmatpush.bf16.msra.mxu3 %v381_v11 }
  0x21   :  { %242 = vmatpush.bf16.msra.mxu0 %v353_v18 }
  0x22   :  { %255 = vmatpush.bf16.msra.mxu1 %v357_v19 }
  0x23   :  { %268 = vmatpush.bf16.msra.mxu2 %v361_v20  ;;  %281 = vmatpush.bf16.msra.mxu3 %v365_v24 }
  0x25   :  { %243 = vmatpush.bf16.msra.mxu0 %v337_v30 }
  0x26   :  { %256 = vmatpush.bf16.msra.mxu1 %v341_v31 }
  0x27   :  { %269 = vmatpush.bf16.msra.mxu2 %v345_v32  ;;  %282 = vmatpush.bf16.msra.mxu3 %v349_v33 }
  0x28   :  { %244 = vmatmul.bf16.vlgmr.msra.gmra.mxu0 %v43_v34 }
  0x29   :  { %257 = vmatmul.bf16.vlgmr.msra.gmra.mxu1 %v43_v34 }
  0x2a   :  { %270 = vmatmul.bf16.vlgmr.msra.gmra.mxu2 %v43_v34  ;;  %283 = vmatmul.bf16.vlgmr.msra.gmra.mxu3 %v43_v34 }
  0x8c   :  { %v307_v35 = vpop.permute.xlu0 %306 }
  0xa5   :  { %v245_v36 = vpop.f32.mrf.mxu0 }
  0xa6   :  { %v258_v37 = vpop.f32.mrf.mxu1  ;;  %v309_v38 = vadd.f32 %v307_v35, %v245_v36 }
  0xa7   :  { %v310_v39 = vadd.f32 %v307_v35, %v258_v37 }
  0xa8   :  { %313 = vst [vmem:[#allocation6] sm:$0xff] %v309_v38 }
  0xa9   :  { %314 = vst [vmem:[#allocation6 + $0x8] sm:$0xff] %v310_v39 }
  0xad   :  { %v271_v40 = vpop.f32.mrf.mxu2  ;;  %v284_v42 = vpop.f32.mrf.mxu3 }
  0xae   :  { %v311_v41 = vadd.f32 %v307_v35, %v271_v40  ;;  %v247_v43 = vpop.f32.mrf.mxu0  ;;  %v312_v44 = vadd.f32 %v307_v35, %v284_v42  ;;  %v260_v45 = vpop.f32.mrf.mxu1 }
  0xb0   :  { %315 = vst [vmem:[#allocation6 + $0x10] sm:$0xff] %v311_v41 }
  0xb1   :  { %316 = vst [vmem:[#allocation6 + $0x18] sm:$0xff] %v312_v44 }
  0xb2   :  { %327 = dma.vmem_to_hbm [thread:$0]  %s323_s22, 512, %s325_s0, [#allocation5]  }
  0xb5   :  { %v273_v46 = vpop.f32.mrf.mxu2  ;;  %v286_v47 = vpop.f32.mrf.mxu3 }
  0xb6   :  { %550 = dma.done.wait [#allocation5], 512  }
  0xb7   :  { %551 = vsyncadd [#allocation5], 4294966784 }
  0xb8   :  { %332 = vsyncpa [#allocation4], 1 }
  0xb9   :  { %333 = vsyncpa [#allocation5], 1 }

</bundles_post_ra>
